<compile_context>
chip_gen: v7x
topology: tpu7x:2x2x1
jax: 0.10.0
libtpu: 0.0.40
codegen_flags: <defaults>
</compile_context>

<pallas_src>
import jax
import jax.numpy as jnp
from jax.experimental import pallas as pl
from jax.experimental.pallas import tpu as pltpu


def _round_up(x, m):
    return (x + m - 1) // m * m


def _pick_tile(dim, max_tile, align, max_waste_frac=0.25):
    """Pick a tile size (multiple of `align`, <= max_tile) that avoids large
    padding waste instead of blindly clamping to max_tile."""
    dim_aligned = _round_up(dim, align)
    if dim_aligned <= max_tile:
        # Single tile covering the whole (aligned) dim: zero extra waste.
        return dim_aligned
    t = max_tile
    while t > align and (_round_up(dim, t) - dim_aligned) > max_waste_frac * dim_aligned:
        t //= 2
    return max(t, align)


# ----------------------------------------------------------------------------
# Kernels
# ----------------------------------------------------------------------------

def _packed_linear_kernel_accout(x_ref, w_ref, b_ref, o_ref):
    # out_dtype == float32: accumulate directly into the resident output block
    # (same block index across the K axis) -> no scratch, no final copy/cast.
    k = pl.program_id(2)

    @pl.when(k == 0)
    def _():
        o_ref[...] = jnp.broadcast_to(b_ref[...], o_ref.shape)

    # Weights are pre-transposed outside the kernel -> straight MXU feed.
    o_ref[...] += jnp.dot(x_ref[...], w_ref[...],
                          preferred_element_type=jnp.float32)


def _packed_linear_kernel_scratch(x_ref, w_ref, b_ref, o_ref, acc_ref):
    # Narrow output dtype: accumulate in an f32 VMEM scratch, cast at the end.
    k = pl.program_id(2)

    @pl.when(k == 0)
    def _():
        acc_ref[...] = jnp.broadcast_to(b_ref[...], acc_ref.shape)

    acc_ref[...] += jnp.dot(x_ref[...], w_ref[...],
                            preferred_element_type=jnp.float32)

    @pl.when(k == pl.num_programs(2) - 1)
    def _():
        o_ref[...] = acc_ref[...].astype(o_ref.dtype)


# ----------------------------------------------------------------------------
# pallas_call wrapper (operands already padded / cast)
# ----------------------------------------------------------------------------

def packed_linear_matmul(x_pad, w_pad, b_pad_2d, *, tm, tn, tk, out_dtype,
                         buffer_count=None):
    """Y = x_pad @ w_pad + b_pad, tiled with f32 accumulation.

    x_pad:    (Mp, Kp)  already padded to tile multiples
    w_pad:    (Kp, Np)  pre-transposed, pre-padded packed weight
    b_pad_2d: (1,  Np)  float32 packed bias
    """
    Mp, Kp = x_pad.shape
    Kp2, Np = w_pad.shape
    assert Kp == Kp2 and b_pad_2d.shape == (1, Np)
    assert Mp % tm == 0 and Np % tn == 0 and Kp % tk == 0

    grid = (Mp // tm, Np // tn, Kp // tk)

    direct_f32 = jnp.dtype(out_dtype) == jnp.dtype(jnp.float32)
    kernel = _packed_linear_kernel_accout if direct_f32 else _packed_linear_kernel_scratch
    scratch = [] if direct_f32 else [pltpu.VMEM((tm, tn), jnp.float32)]

    if buffer_count is not None:
        x_spec = pl.BlockSpec((tm, tk), lambda i, j, k: (i, k),
                              pipeline_mode=pl.Buffered(buffer_count))
        w_spec = pl.BlockSpec((tk, tn), lambda i, j, k: (k, j),
                              pipeline_mode=pl.Buffered(buffer_count))
    else:
        x_spec = pl.BlockSpec((tm, tk), lambda i, j, k: (i, k))
        w_spec = pl.BlockSpec((tk, tn), lambda i, j, k: (k, j))
    b_spec = pl.BlockSpec((1, tn), lambda i, j, k: (0, j))

    # VMEM budget: n-buffered x/W tiles + double-buffered output + scratch.
    nbuf = 2 if buffer_count is None else buffer_count
    x_item = x_pad.dtype.itemsize
    w_item = w_pad.dtype.itemsize
    o_item = jnp.dtype(out_dtype).itemsize
    footprint = (nbuf * (tm * tk * x_item + tk * tn * w_item)
                 + 2 * tn * 4
                 + 2 * tm * tn * o_item
                 + (0 if direct_f32 else tm * tn * 4))
    # Give the compiler headroom but never ask past v7x's 64 MiB/TC physical.
    vmem_limit = int(min(64 << 20, max(32 << 20, 4 * footprint)))

    cost = pl.CostEstimate(
        flops=int(2 * Mp * Np * Kp),
        transcendentals=0,
        bytes_accessed=int(
            Mp * Kp * x_item * (Np // tn)        # x re-read per N tile
            + Kp * Np * w_item * (Mp // tm)      # W re-read per M tile
            + Np * 4                             # bias
            + Mp * Np * o_item),                 # output
    )

    return pl.pallas_call(
        kernel,
        out_shape=jax.ShapeDtypeStruct((Mp, Np), out_dtype),
        grid_spec=pltpu.PrefetchScalarGridSpec(
            num_scalar_prefetch=0,
            grid=grid,
            in_specs=[x_spec, w_spec, b_spec],
            out_specs=pl.BlockSpec((tm, tn), lambda i, j, k: (i, j)),
            scratch_shapes=scratch,
        ),
        compiler_params=pltpu.CompilerParams(
            dimension_semantics=("parallel", "parallel", "arbitrary"),
            vmem_limit_bytes=vmem_limit,
        ),
        cost_estimate=cost,
    )(x_pad, w_pad, b_pad_2d)


# ----------------------------------------------------------------------------
# Module wrapper
# ----------------------------------------------------------------------------

class MultipleParallelFinetuningBlock:
    """JAX/Pallas port of the PyTorch MultipleParallelFinetuningBlock (Linear)."""

    def __init__(self, original_params, pruned_params_list, module_type,
                 head_mask_list=None, compute_dtype=jnp.bfloat16,
                 tm=512, tn=512, tk=1024, buffer_count=None):
        assert module_type == "Linear", "Only Linear is implemented here"
        # TODO(synk): MultiheadAttention variant (with head_mask_list) not implemented.
        self.module_type = module_type
        self.original_params = original_params            # (W, b), torch layout (out, in)
        self.pruned_params_list = pruned_params_list      # list of (W, b)
        self.out_original = None
        self.out_pruned_list = []
        self.weight = original_params[0]                  # mirrors `self.weight = original_module.weight`

        w_orig, b_orig = original_params
        self.out_features, self.in_features = w_orig.shape
        self.num_modules = 1 + len(pruned_params_list)

        # Pack all module weights along N, pre-transposed once at init:
        #   W_packed[:, m*out : (m+1)*out] = W_m^T
        ws = [w_orig] + [w for (w, _) in pruned_params_list]
        bs = [b_orig] + [b for (_, b) in pruned_params_list]
        w_packed = jnp.concatenate([w.T for w in ws], axis=1)     # (in, K*out)
        b_packed = jnp.concatenate(bs, axis=0)                    # (K*out,)

        K_in = self.in_features
        N = self.num_modules * self.out_features
        self._N = N

        # Static tile choices for K / N (padding-waste aware).
        self._tn = _pick_tile(N, tn, 128)
        self._tk = _pick_tile(K_in, tk, 128)
        self._tm_max = tm
        self._Kp = _round_up(K_in, self._tk)
        self._Np = _round_up(N, self._tn)

        # Pre-pad + pre-cast the static operands ONCE (no per-call HBM pass).
        if (self._Kp, self._Np) != (K_in, N):
            w_packed = jnp.pad(w_packed,
                               ((0, self._Kp - K_in), (0, self._Np - N)))
        if compute_dtype is not None:
            w_packed = w_packed.astype(compute_dtype)
        b_packed = b_packed.astype(jnp.float32)                   # bias/epilogue stays f32
        if self._Np != N:
            b_packed = jnp.pad(b_packed, ((0, self._Np - N),))
        self._w_packed = w_packed
        self._b_packed = b_packed.reshape(1, self._Np)

        self._compute_dtype = compute_dtype                        # e.g. jnp.bfloat16
        self._buffer_count = buffer_count

    def __call__(self, x):
        # x: (batch, seq, in_features)
        batch, seq, in_f = x.shape
        assert in_f == self.in_features
        out_dtype = x.dtype
        M = batch * seq

        x_flat = x.reshape(M, in_f)
        if self._compute_dtype is not None and x_flat.dtype != self._compute_dtype:
            x_flat = x_flat.astype(self._compute_dtype)

        # Pick tm; guarantee >= 2 parallel output tiles when the problem would
        # otherwise be a single (M, N) tile (v7x has 2 TensorCores).
        tm = _pick_tile(M, self._tm_max, 8)
        Mp = _round_up(M, tm)
        if (self._Np // self._tn) == 1 and (Mp // tm) == 1 and M >= 16:
            tm = _round_up((M + 1) // 2, 8)
            Mp = _round_up(M, tm)

        if (Mp, self._Kp) != (M, in_f):
            x_flat = jnp.pad(x_flat, ((0, Mp - M), (0, self._Kp - in_f)))

        y = packed_linear_matmul(x_flat, self._w_packed, self._b_packed,
                                 tm=tm, tn=self._tn, tk=self._tk,
                                 out_dtype=out_dtype,
                                 buffer_count=self._buffer_count)

        # Each module's output is a contiguous lane slice of the packed result;
        # the M un-pad slice is folded in (no reshape->moveaxis transpose pass).
        of = self.out_features
        outs = [y[:M, m * of:(m + 1) * of].reshape(batch, seq, of)
                for m in range(self.num_modules)]

        # NOTE: these Python-attribute stashes mirror the PyTorch module but are
        # side effects; under jax.jit, callers should re-slice the packed output.
        self.out_original = outs[0]
        self.out_pruned_list = outs[1:]
        # Forward returns the ORIGINAL module's output, same as the PyTorch block.
        return self.out_original


if __name__ == "__main__":
    key = jax.random.PRNGKey(0)

    batch, seq, in_features, out_features = 2, 8, 32, 32
    num_pruned = 2

    k_x, k_w0, k_b0, *k_pruned = jax.random.split(key, 3 + 2 * num_pruned)

    x = jax.random.normal(k_x, (batch, seq, in_features), dtype=jnp.float32)

    # Deterministic parameter init (synthetic; ~Kaiming-uniform-like scale).
    scale = 1.0 / jnp.sqrt(jnp.float32(in_features))
    w_orig = jax.random.uniform(
        k_w0, (out_features, in_features), minval=-scale, maxval=scale, dtype=jnp.float32)
    b_orig = jax.random.uniform(
        k_b0, (out_features,), minval=-scale, maxval=scale, dtype=jnp.float32)

    pruned_params = []
    for i in range(num_pruned):
        kw, kb = k_pruned[2 * i], k_pruned[2 * i + 1]
        w_p = jax.random.uniform(
            kw, (out_features, in_features), minval=-scale, maxval=scale, dtype=jnp.float32)
        b_p = jax.random.uniform(
            kb, (out_features,), minval=-scale, maxval=scale, dtype=jnp.float32)
        # Emulate "pruned" modules by zeroing some output rows of the weight.
        mask = (jnp.arange(out_features) % (i + 2) != 0).astype(jnp.float32)
        w_p = w_p * mask[:, None]
        pruned_params.append((w_p, b_p))

    # Plain-JAX references.
    ref_orig = jnp.einsum("bsi,oi->bso", x, w_orig) + b_orig
    refs_pruned = [jnp.einsum("bsi,oi->bso", x, w_p) + b_p
                   for (w_p, b_p) in pruned_params]

    # --- 1) f32 compute path (tight tolerance) --------------------------------
    block_f32 = MultipleParallelFinetuningBlock(
        (w_orig, b_orig), pruned_params, "Linear", compute_dtype=jnp.float32)
    out_f32 = jax.block_until_ready(block_f32(x))
    for z in block_f32.out_pruned_list:
        jax.block_until_ready(z)
    assert jnp.allclose(out_f32, ref_orig, atol=1e-4, rtol=1e-4)
    for ref_p, z_p in zip(refs_pruned, block_f32.out_pruned_list):
        assert jnp.allclose(z_p, ref_p, atol=1e-4, rtol=1e-4)

    # --- 2) default bf16 compute path (looser tolerance) ----------------------
    block_bf16 = MultipleParallelFinetuningBlock(
        (w_orig, b_orig), pruned_params, "Linear")          # compute_dtype=bfloat16
    out_bf16 = jax.block_until_ready(block_bf16(x))
    for z in block_bf16.out_pruned_list:
        jax.block_until_ready(z)
    assert jnp.allclose(out_bf16, ref_orig, atol=2e-2, rtol=2e-2)
    for ref_p, z_p in zip(refs_pruned, block_bf16.out_pruned_list):
        assert jnp.allclose(z_p, ref_p, atol=2e-2, rtol=2e-2)

    # --- 3) bf16 input/output (exercises the scratch-epilogue kernel) ---------
    out_bf16_io = jax.block_until_ready(block_bf16(x.astype(jnp.bfloat16)))
    assert jnp.allclose(out_bf16_io.astype(jnp.float32), ref_orig,
                        atol=3e-2, rtol=3e-2)

    print("KERNEL_OK")
</pallas_src>

<mosaic_0001>
module attributes {stable_mosaic.version = 11 : i64} {
  func.func @_packed_linear_kernel_accout(%arg0: i32, %arg1: i32, %arg2: i32, %arg3: memref<8x128xf32, #tpu.memory_space<vmem>>, %arg4: memref<128x128xf32, #tpu.memory_space<vmem>>, %arg5: memref<1x128xf32, #tpu.memory_space<vmem>>, %arg6: memref<8x128xf32, #tpu.memory_space<vmem>>) attributes {dimension_semantics = [#tpu.dimension_semantics<parallel>, #tpu.dimension_semantics<parallel>, #tpu.dimension_semantics<arbitrary>], iteration_bounds = array<i64: 2, 1, 1>, scalar_prefetch = 0 : i64, scratch_operands = 0 : i64, tpu.core_type = #tpu.core_type<tc>, window_params = [{transform_indices = @transform_0, window_bounds = array<i64: 8, 128>}, {transform_indices = @transform_1, window_bounds = array<i64: 128, 128>}, {transform_indices = @transform_2, window_bounds = array<i64: 1, 128>}, {transform_indices = @transform_3, window_bounds = array<i64: 8, 128>}]} {
    %c0_i32 = arith.constant 0 : i32
    %0 = arith.cmpi eq, %arg2, %c0_i32 : i32
    %1 = arith.extui %0 : i1 to i32
    %c0_i32_0 = arith.constant 0 : i32
    %2 = arith.cmpi ne, %1, %c0_i32_0 : i32
    scf.if %2 {
      %c0_8 = arith.constant 0 : index
      %c0_9 = arith.constant 0 : index
      %9 = vector.load %arg5[%c0_8, %c0_9] : memref<1x128xf32, #tpu.memory_space<vmem>>, vector<1x128xf32>
      %10 = vector.shape_cast %9 : vector<1x128xf32> to vector<1x128xf32>
      %11 = vector.broadcast %10 : vector<1x128xf32> to vector<8x128xf32>
      %c0_10 = arith.constant 0 : index
      %c0_11 = arith.constant 0 : index
      %12 = vector.load %arg6[%c0_10, %c0_11] : memref<8x128xf32, #tpu.memory_space<vmem>>, vector<8x128xf32>
      tpu.vector_store %arg6[%c0_10, %c0_11], %11 {strides = array<i32>} : memref<8x128xf32, #tpu.memory_space<vmem>>, vector<8x128xf32>,
    } else {
    }
    %c0 = arith.constant 0 : index
    %c0_1 = arith.constant 0 : index
    %3 = vector.load %arg6[%c0, %c0_1] : memref<8x128xf32, #tpu.memory_space<vmem>>, vector<8x128xf32>
    %c0_2 = arith.constant 0 : index
    %c0_3 = arith.constant 0 : index
    %4 = vector.load %arg3[%c0_2, %c0_3] : memref<8x128xf32, #tpu.memory_space<vmem>>, vector<8x128xf32>
    %c0_4 = arith.constant 0 : index
    %c0_5 = arith.constant 0 : index
    %5 = vector.load %arg4[%c0_4, %c0_5] : memref<128x128xf32, #tpu.memory_space<vmem>>, vector<128x128xf32>
    %cst = arith.constant dense<0.000000e+00> : vector<8x128xf32>
    %6 = tpu.matmul %4, %5, %cst {dimension_numbers = #tpu.dot_dimension_numbers<[1], [0], [0], [1], [0, 0, 1, 1], [], []>} : vector<8x128xf32>, vector<128x128xf32>, vector<8x128xf32> -> vector<8x128xf32>
    %7 = arith.addf %3, %6 : vector<8x128xf32>
    %c0_6 = arith.constant 0 : index
    %c0_7 = arith.constant 0 : index
    %8 = vector.load %arg6[%c0_6, %c0_7] : memref<8x128xf32, #tpu.memory_space<vmem>>, vector<8x128xf32>
    tpu.vector_store %arg6[%c0_6, %c0_7], %7 {strides = array<i32>} : memref<8x128xf32, #tpu.memory_space<vmem>>, vector<8x128xf32>,
    return
  }
  func.func @transform_0(%arg0: i32, %arg1: i32, %arg2: i32) -> (i32, i32) {
    %c0_i32 = arith.constant 0 : i32
    return %arg0, %arg2 : i32, i32
  }
  func.func @transform_1(%arg0: i32, %arg1: i32, %arg2: i32) -> (i32, i32) {
    %c0_i32 = arith.constant 0 : i32
    return %arg2, %arg1 : i32, i32
  }
  func.func @transform_2(%arg0: i32, %arg1: i32, %arg2: i32) -> (i32, i32) {
    %c0_i32 = arith.constant 0 : i32
    %c0_i32_0 = arith.constant 0 : i32
    return %c0_i32, %arg1 : i32, i32
  }
  func.func @transform_3(%arg0: i32, %arg1: i32, %arg2: i32) -> (i32, i32) {
    %c0_i32 = arith.constant 0 : i32
    return %arg0, %arg1 : i32, i32
  }
}

</mosaic_0001>

<bundles_post_ra>
// kernel: tpu_custom_call.1
= control target key start
LH: loop header
LB: loop body
LE: loop exit
PB: predicated region body
PF: predicated region fallthrough
CT: control target
= control target key end

     0   :  { %8 = vsyncpa [#allocation3], 0  ;;  %s1046_s0 = inlined_call_operand.hbm [shape: f32[16,128], index: 0, kind: input, shape index: {}]   ;;  %s1047_s1 = inlined_call_operand.hbm [shape: f32[128,128], index: 1, kind: input, shape index: {}]   ;;  %s1048_s2 = inlined_call_operand.vmem [shape: f32[1,128], index: 2, kind: input, shape index: {}]   ;;  %s1049_s3 = inlined_call_operand.hbm [shape: f32[16,128], index: 3, kind: output, shape index: {}]  }
   0x1   :  { %10 = vsyncpa [#allocation3 + $0x1], 0 }
   0x2   :  { %11 = vsyncpa [#allocation6], 0 }
   0x3   :  { %12 = vsyncpa [#allocation4], 0 }
   0x4   :  { %14 = vsyncpa [#allocation4 + $0x1], 0  ;;  %s822_s12 = smov 0   ;;  %s824_s13 = smov 0  }
   0x5   :  { %s826_s14 = smov 0   ;;  %s828_s15 = smov 0  }
   0x6   :  { %s830_s16 = smov 0   ;;  %s832_s17 = smov 0  }
   0x7 LB: > { %s477_s18 = sadd.s32 4294967295, %s792_s17   ;;  %s478_s19 = sadd.s32 4294967294, %s792_s17   ;;  %s792_s17 = sphi %s832_s17, %s20_s17   ;;  %s788_s16 = sphi %s830_s16, %s1073_s16   ;;  %s784_s15 = sphi %s828_s15, %s1072_s15   ;;  %s780_s14 = sphi %s826_s14, %s1071_s14   ;;  %s776_s13 = sphi %s824_s13, %s1070_s13   ;;  %s772_s12 = sphi %s822_s12, %s1069_s12  }
   0x8   : > { %p61_p0 = scmp.ne.s32.totalorder %s776_s13, %s772_s12  ;;  %p856_p1 = scmp.eq.s32.totalorder %s477_s18, 0 }
   0x9   : > { %p860_p2 = scmp.eq.s32.totalorder %s477_s18, 1  ;;  %p147_p3 = scmp.eq.s32.totalorder %s478_s19, 1 }
   0xa   : > { %s1054_s20 = scalar_select %p856_p1, 1, 0 }
   0xb   : > { %s1055_s21 = scalar_select %p860_p2, 1, 0 }
   0xc   : > { %p866_p4 = por %p856_p1, %p61_p0  ;;  %p479_p5 = scmp.ge.s32.totalorder %s792_s17, 1 }
   0xd   : > { %p871_p6 = por %p147_p3, %p61_p0  ;;  %p154_p7 = scmp.lt.s32.totalorder %s792_s17, 3 }
   0xe   : > { %s1056_s22 = scalar_select %p866_p4, 1, 0 }
   0xf   : > { %s1057_s23 = scalar_select %p871_p6, 1, 0 }
  0x10   : > { %p876_p8 = pnand %p479_p5, %p154_p7  ;;  %s794_s25 = smov [#allocation5]  }
  0x11   : > { %s170_s26 = sshll.u32 %s794_s25, 4  ;;  %s39_s28 = sadd.s32 1, %s788_s16  ;;  %s171_s26 = int_to_ptr.vmem [resolvable:$true] %s170_s26 }
  0x12   : > { %s1058_s24 = scalar_select %p876_p8, 1, 0 }
  0x13   : > { %p578_p9 = pneg %p876_p8  ;;  %s648_s4 = scalar_lea.hbm %s1047_s1, 2048 }
  0x14   : > { %p649_p12 = scmp.ne.s32.totalorder %s1047_s1, %s648_s4  ;;  %p655_p5 = scmp.lt.u32.totalorder %s648_s4, %s1047_s1 }
  0x15   : > { %p885_p11 = pnand %p578_p9, %p856_p1 }
  0x17   : > { %p650_p13 = pneg %p885_p11 }
  0x19   : > { %p651_p0 = pnand %p650_p13, %p649_p12 }
  0x1b   : > { %p652_p3 = pneg %p651_p0 }
  0x1d   : > { %p657_p7 = pnand %p655_p5, %p652_p3 }
  0x1f   : > { %660 = shalt.err (!%p657_p7)
}
  0x20   : > { %s661_s9 = scalar_lea.vmem %s171_s26, 2048  ;;  %p669_p1 = scmp.lt.s32.totalorder %s171_s26, %s171_s26 }
  0x21   : > { %p662_p9 = scmp.ne.s32.totalorder %s171_s26, %s661_s9  ;;  %p670_p4 = scmp.lt.s32.totalorder %s661_s9, %s661_s9 }
  0x23   : > { %p664_p10 = pnand %p662_p9, %p650_p13  ;;  %p671_p8 = por %p670_p4, %p669_p1 }
  0x25   : > { %p665_p6 = pneg %p664_p10 }
  0x27   : > { %p672_p2 = pnand %p671_p8, %p665_p6 }
  0x29   : > { %675 = shalt.err (!%p672_p2)
}
  0x2a   : > { %s795_s10 = smov 128   ;;  %s796_s11 = smov 8  }
  0x2b   : > { %581 = dma.hbm_to_vmem [thread:$0]  (!%p885_p11), %s1047_s1, 2048, %s171_s26, [#allocation6], %s795_s10, %s795_s10, %s796_s11  }
  0x2c   : > { %p41_p1 = scmp.ge.s32.totalorder %s39_s28, 2  ;;  %s48_s25 = sadd.s32 1, %s780_s14 }
  0x2d   : > { %p55_p2 = scmp.ne.s32.totalorder %s780_s14, %s776_s13  ;;  %p56_p4 = scmp.eq.s32.totalorder %s792_s17, 0 }
  0x2e   : > { %s1075_s28 = smov (%p41_p1, %s39_s28), 0  ;;  %p1061_p8 = scmp.ne.s32.totalorder %s1055_s21, 0 }
  0x2f   : > { %p912_p6 = por %p56_p4, %p55_p2  ;;  %s43_s27 = ssub.s32 %s788_s16, %s1075_s28 }
  0x30   : > { %p918_p10 = por %p1061_p8, %p55_p2  ;;  %p591_p12 = scmp.lt.s32.totalorder %s792_s17, 2 }
  0x31   : > { %p46_p11 = scmp.eq.s32.totalorder %s43_s27, 0  ;;  %s190_s26 = sand.u32 1, %s780_s14  }
  0x32   : > { %s483_s4 = sshll.u32 %s190_s26, 3  ;;  %s484_s6 = sshll.u32 %s788_s16, 7 }
  0x33   : > { %s927_s5 = scalar_select %p46_p11, %s780_s14, %s48_s25  }
  0x34   : > { %s933_s9 = scalar_lea.hbm %s1046_s0, %s484_s6  ;;  %s194_s21 = scalar_lea.vmem [#allocation2], %s483_s4 }
  0x35   : > { %s202_s10 = sshll.u32 %s194_s21, 4  ;;  %p939_p13 = pnand %p591_p12, %p912_p6  ;;  %s935_s10 = int_to_ptr.vmem [resolvable:$true] %s202_s10 }
  0x36   : > { %s191_s18 = scalar_lea.sflag [#allocation3], %s190_s26  ;;  %s676_s19 = scalar_lea.hbm %s933_s9, 128 }
  0x37   : > { %p677_p0 = scmp.ne.s32.totalorder %s933_s9, %s676_s19  ;;  %p678_p3 = pneg %p939_p13 }
  0x38   : > { %s681_s4 = scalar_lea.hbm %s1046_s0, 256  ;;  %p682_p9 = scmp.lt.u32.totalorder %s933_s9, %s1046_s0 }
  0x39   : > { %p679_p5 = pnand %p678_p3, %p677_p0  ;;  %p683_p1 = scmp.lt.u32.totalorder %s681_s4, %s676_s19 }
  0x3a   : > { %p685_p4 = scmp.lt.u32.totalorder %s676_s19, %s933_s9 }
  0x3b   : > { %p680_p7 = pneg %p679_p5  ;;  %p684_p2 = por %p683_p1, %p682_p9 }
  0x3d   : > { %p686_p6 = por %p685_p4, %p684_p2 }
  0x3f   : > { %p687_p8 = pnand %p686_p6, %p680_p7 }
  0x41   : > { %690 = shalt.err (!%p687_p8)
}
  0x42   : > { %s691_s26 = scalar_lea.vmem %s935_s10, 128  ;;  %s797_s7 = smov [#allocation2]  }
  0x43   : > { %p692_p12 = scmp.ne.s32.totalorder %s935_s10, %s691_s26  ;;  %s696_s8 = sshll.u32 %s797_s7, 4  ;;  %s697_s8 = int_to_ptr.vmem [resolvable:$false] %s696_s8 }
  0x44   : > { %s698_s21 = scalar_lea.vmem %s697_s8, 256  ;;  %p699_p5 = scmp.lt.s32.totalorder %s935_s10, %s697_s8 }
  0x45   : > { %p694_p11 = pnand %p692_p12, %p678_p3  ;;  %p700_p9 = scmp.lt.s32.totalorder %s698_s21, %s691_s26 }
  0x47   : > { %p695_p0 = pneg %p694_p11  ;;  %p701_p1 = por %p700_p9, %p699_p5 }
  0x49   : > { %p702_p2 = pnand %p701_p1, %p695_p0 }
  0x4b   : > { %705 = shalt.err (!%p702_p2)
}
  0x4c   : > { %585 = dma.hbm_to_vmem [thread:$0]  (!%p939_p13), %s933_s9, 128, %s935_s10, %s191_s18  }
  0x4d   : > { %p1064_p7 = scmp.ne.s32.totalorder %s1058_s24, 0 }
  0x4e   : > { %s971_s19 = sand.u32 (!%p1064_p7), 1, %s776_s13   ;;  %p1065_p3 = scmp.ne.s32.totalorder (!%p1064_p7), %s1056_s22, 0 }
  0x4f   : > { %211 = sbr.rel (%p1064_p7) target bundleno = 353 (0x161), region = 32  ;;  %s486_s25 = sshll.u32 (!%p1064_p7), %s971_s19, 3 }
  0x50   : > { %s214_s27 = scalar_lea.sflag (!%p1064_p7), [#allocation3], %s971_s19  ;;  %s977_s4 = scalar_lea.vmem (!%p1064_p7), [#allocation2], %s486_s25 }
  0x56   : > { %759 = dma.done.wait (%p1065_p3), %s214_s27, 128  }
  0x57   : > { %761 = vsyncadd (%p1065_p3), %s214_s27, 4294967168  ;;  %p1066_p13 = scmp.ne.s32.totalorder %s1054_s20, 0 }
  0x59   : > { %763 = dma.done.wait (%p1066_p13), [#allocation6], 2048  }
  0x5a   : > { %765 = vsyncadd (%p1066_p13), [#allocation6], 4294965248  ;;  %v798_v0 = vmov 0.0|0.0   ;;  %vm799_vm0 = vmmov 0   ;;  %v800_v1 = vmov 0.0   ;;  %v265_v2 = vld [vmem:[#allocation5] sm:$0xff] }
  0x5b   : > { %546 = vmatprep.subr.bf16.mxu0 %v798_v0  ;;  %543 = vmatprep.mubr.msk.f32.mxu0 %vm799_vm0, %v800_v1  ;;  %v266_v3 = vld [vmem:[#allocation5 + $0x8] sm:$0xff]  ;;  %v267_v4 = vld [vmem:[#allocation5 + $0x10] sm:$0xff]  ;;  %v268_v6 = vld [vmem:[#allocation5 + $0x18] sm:$0xff]  ;;  %s491_s24 = sshll.u32 %s784_s15, 7  ;;  %s246_s9 = scalar_lea.vmem [#allocation7], %s486_s25 }
  0x5c   : > { %v547_v5 = vpack.c.bf16 %v266_v3, %v265_v2  ;;  %v550_v7 = vpack.c.bf16 %v268_v6, %v267_v4  ;;  %v269_v8 = vld [vmem:[#allocation5 + $0x20] sm:$0xff]  ;;  %v270_v9 = vld [vmem:[#allocation5 + $0x28] sm:$0xff]  ;;  %v271_v11 = vld [vmem:[#allocation5 + $0x30] sm:$0xff]  ;;  %s368_s10 = sshll.u32 %s246_s9, 4  ;;  %s997_s29 = scalar_lea.hbm %s1049_s3, %s491_s24  ;;  %s999_s10 = int_to_ptr.vmem [resolvable:$true] %s368_s10 }
  0x5d   : > { %v553_v10 = vpack.c.bf16 %v270_v9, %v269_v8  ;;  %v272_v12 = vld [vmem:[#allocation5 + $0x38] sm:$0xff]  ;;  %v273_v14 = vld [vmem:[#allocation5 + $0x40] sm:$0xff]  ;;  %v274_v15 = vld [vmem:[#allocation5 + $0x48] sm:$0xff]  ;;  %s354_s6 = scalar_lea.sflag [#allocation4], %s971_s19  ;;  %s706_s26 = scalar_lea.vmem %s999_s10, 128 }
  0x5e   : > { %548 = vmatpush3.bf16.msra.mxu0 %v547_v5  ;;  %v556_v13 = vpack.c.bf16 %v272_v12, %v271_v11  ;;  %v559_v16 = vpack.c.bf16 %v274_v15, %v273_v14  ;;  %v275_v17 = vld [vmem:[#allocation5 + $0x50] sm:$0xff]  ;;  %v276_v18 = vld [vmem:[#allocation5 + $0x58] sm:$0xff]  ;;  %v277_v20 = vld [vmem:[#allocation5 + $0x60] sm:$0xff]  ;;  %p707_p4 = scmp.ne.s32.totalorder %s999_s10, %s706_s26  ;;  %s801_s15 = smov [#allocation7]  }
  0x5f   : > { %549 = vmatprep.subr.bf16.mxu0 %v798_v0  ;;  %v562_v19 = vpack.c.bf16 %v276_v18, %v275_v17  ;;  %v278_v21 = vld [vmem:[#allocation5 + $0x68] sm:$0xff]  ;;  %v279_v23 = vld [vmem:[#allocation5 + $0x70] sm:$0xff]  ;;  %v280_v24 = vld [vmem:[#allocation5 + $0x78] sm:$0xff]  ;;  %s710_s7 = sshll.u32 %s801_s15, 4  ;;  %s711_s7 = int_to_ptr.vmem [resolvable:$false] %s710_s7 }
  0x60   : > { %v565_v22 = vpack.c.bf16 %v278_v21, %v277_v20  ;;  %v568_v25 = vpack.c.bf16 %v280_v24, %v279_v23  ;;  %v264_v26 = vld [vmem:[%s977_s4] sm:$0xff]  ;;  %p708_p6 = pnand %p707_p4, %p918_p10  ;;  %s712_s8 = scalar_lea.vmem %s711_s7, 256 }
  0x61   : > { %v489_v27 = vld [vmem:[%s1048_s2] ss:$0 sm:$0xff]  ;;  %p713_p12 = scmp.lt.s32.totalorder %s999_s10, %s711_s7  ;;  %p714_p11 = scmp.lt.s32.totalorder %s712_s8, %s706_s26 }
  0x62   : > { %551 = vmatpush3.bf16.msra.mxu0 %v550_v7  ;;  %p709_p8 = pneg %p708_p6 }
  0x63   : > { %552 = vmatprep.subr.bf16.mxu0 %v798_v0  ;;  %p715_p0 = por %p714_p11, %p713_p12 }
  0x65   : > { %p716_p5 = pnand %p715_p0, %p709_p8 }
  0x66   : > { %554 = vmatpush3.bf16.msra.mxu0 %v553_v10 }
  0x67   : > { %555 = vmatprep.subr.bf16.mxu0 %v798_v0 }
  0x6a   : > { %557 = vmatpush3.bf16.msra.mxu0 %v556_v13 }
  0x6b   : > { %558 = vmatprep.subr.bf16.mxu0 %v798_v0 }
  0x6e   : > { %560 = vmatpush3.bf16.msra.mxu0 %v559_v16 }
  0x6f   : > { %561 = vmatprep.subr.bf16.mxu0 %v798_v0 }
  0x72   : > { %563 = vmatpush3.bf16.msra.mxu0 %v562_v19 }
  0x73   : > { %564 = vmatprep.subr.bf16.mxu0 %v798_v0 }
  0x76   : > { %566 = vmatpush3.bf16.msra.mxu0 %v565_v22 }
  0x77   : > { %567 = vmatprep.subr.bf16.mxu0 %v798_v0 }
  0x7a   : > { %569 = vmatpush3.bf16.msra.mxu0 %v568_v25 }
  0x7d   : > { %544 = vmatmul.mubr.f32.vlgmr.msra.gmra.mrb[0].mxu0 %v264_v26 }
 0x150   : > { %v347_v28 = vpop.f32.mrb[0].mxu0 }
 0x151   : > { %v351_v29 = vadd.f32 %v489_v27, %v347_v28  ;;  %v545_v30 = vpop.f32.mrb[1].mxu0 }
 0x153   : > { %352 = vst [vmem:[%s246_s9] sm:$0xff] %v351_v29 }
 0x154   : > { %719 = shalt.err (!%p716_p5)
}
 0x155   : > { %s720_s21 = scalar_lea.hbm %s997_s29, 128  ;;  %s724_s27 = scalar_lea.hbm %s1049_s3, 256 }
 0x156   : > { %p721_p9 = scmp.ne.s32.totalorder %s997_s29, %s720_s21  ;;  %p725_p7 = scmp.lt.u32.totalorder %s997_s29, %s1049_s3 }
 0x157   : > { %p726_p3 = scmp.lt.u32.totalorder %s724_s27, %s720_s21  ;;  %p728_p4 = scmp.lt.u32.totalorder %s720_s21, %s997_s29 }
 0x158   : > { %p722_p1 = pnand %p721_p9, %p918_p10 }
 0x159   : > { %p727_p13 = por %p726_p3, %p725_p7 }
 0x15a   : > { %p723_p2 = pneg %p722_p1 }
 0x15b   : > { %p729_p6 = por %p728_p4, %p727_p13 }
 0x15d   : > { %p730_p8 = pnand %p729_p6, %p723_p2 }
 0x15f   : > { %733 = shalt.err (!%p730_p8)
}
 0x160   : > { %576 = dma.vmem_to_hbm [thread:$0]  (%p918_p10), %s999_s10, 128, %s997_s29, %s354_s6  }
 0x161 PF: > { %s380_s22 = sand.u32 1, %s772_s12   ;;  %p1067_p12 = scmp.ne.s32.totalorder %s1057_s23, 0 }
 0x162   : > { %p1068_p11 = scmp.ge.s32.totalorder %s792_s17, 2  ;;  %s381_s24 = scalar_lea.sflag [#allocation4], %s380_s22 }
 0x164   : > { %p587_p0 = pnand %p1068_p11, %p1067_p12 }
 0x166   : > { %767 = dma.done.wait (!%p587_p0), %s381_s24, 128  }
 0x167   : > { %769 = vsyncadd (!%p587_p0), %s381_s24, 4294967168  ;;  %s20_s17 = sadd.s32 1, %s792_s17   ;;  %s1069_s12 = smov %s776_s13 }
 0x168   : > { %p17_p5 = scmp.ge.s32.totalorder %s20_s17, 4   ;;  %s1070_s13 = smov %s780_s14 }
 0x169   : > { %s1071_s14 = smov %s927_s5  ;;  %s1072_s15 = smov %s788_s16 }
 0x16a   : > { %s1073_s16 = smov %s1075_s28  ;;  %19 = sbr.rel (!%p17_p5) target bundleno = 7 (0x7), region = 89 }
 0x171   :  { %386 = vsyncpa [#allocation3], 1 }
 0x172   :  { %388 = vsyncpa [#allocation3 + $0x1], 1 }
 0x173   :  { %389 = vsyncpa [#allocation6], 1 }
 0x174   :  { %390 = vsyncpa [#allocation4], 1 }
 0x175   :  { %392 = vsyncpa [#allocation4 + $0x1], 1 }

</bundles_post_ra>
